<compile_context>
chip_gen: v6e
topology: v6e:2x2x1
jax: 0.10.0
libtpu: 0.0.40
codegen_flags: <defaults>
</compile_context>

<pallas_src>
import functools

import jax
import jax.numpy as jnp
from jax.experimental import pallas as pl
from jax.experimental.pallas import tpu as pltpu

EPS = 1e-10


def _round_up(a, b):
    return (a + b - 1) // b * b


def _block_mse_kernel(x_ref, y_ref, o_ref,
                      ph_ref, pw_ref, acc_sq_ref, acc_xy_ref,
                      *, bs, hb, wb, tn):
    s = pl.program_id(1)

    @pl.when(s == 0)
    def _init():
        hbp, h = ph_ref.shape
        w, wbp = pw_ref.shape
        # Row-pooling matrix P_h[a, r] = 1 iff a*bs <= r < (a+1)*bs and a < hb.
        blk_h = jax.lax.broadcasted_iota(jnp.int32, (hbp, h), 0)
        pos_h = jax.lax.broadcasted_iota(jnp.int32, (hbp, h), 1)
        ph_ref[...] = ((pos_h >= blk_h * bs)
                       & (pos_h < (blk_h + 1) * bs)
                       & (blk_h < hb)).astype(jnp.float32)
        # Col-pooling matrix P_w[c, b] = 1 iff b*bs <= c < (b+1)*bs and b < wb.
        pos_w = jax.lax.broadcasted_iota(jnp.int32, (w, wbp), 0)
        blk_w = jax.lax.broadcasted_iota(jnp.int32, (w, wbp), 1)
        pw_ref[...] = ((pos_w >= blk_w * bs)
                       & (pos_w < (blk_w + 1) * bs)
                       & (blk_w < wb)).astype(jnp.float32)
        acc_sq_ref[...] = jnp.zeros_like(acc_sq_ref)
        acc_xy_ref[...] = jnp.zeros_like(acc_xy_ref)

    ph = ph_ref[...]          # (Hb_pad, H)
    pw = pw_ref[...]          # (W, Wb_pad)

    sq_acc = acc_sq_ref[...]  # (Hb_pad, Wb_pad)
    xy_acc = acc_xy_ref[...]  # (H, W)
    for n in range(tn):       # static unroll over images in this step
        xn = x_ref[n]         # (H, W)
        yn = y_ref[n]
        d = xn - yn           # pool the difference (linearity): 2 matmuls
        db = jnp.dot(jnp.dot(ph, d, preferred_element_type=jnp.float32), pw,
                     preferred_element_type=jnp.float32)
        sq_acc = sq_acc + db * db
        xy_acc = xy_acc + (xn + yn)
    acc_sq_ref[...] = sq_acc
    acc_xy_ref[...] = xy_acc

    @pl.when(s == pl.num_programs(1) - 1)
    def _finalize():
        # Single deferred cross-lane reduce per core, then a lane-dense store.
        total_sq = jnp.sum(acc_sq_ref[...])
        total_xy = jnp.sum(acc_xy_ref[...])
        sub = jax.lax.broadcasted_iota(jnp.int32, (8, 128), 0)
        lane = jax.lax.broadcasted_iota(jnp.int32, (8, 128), 1)
        o_ref[...] = jnp.where((sub == 0) & (lane == 0), total_sq,
                               jnp.where((sub == 0) & (lane == 1),
                                         total_xy, 0.0))


@functools.partial(jax.jit, static_argnames=("block_size",))
def block_mse_loss(x, y, block_size=16):
    """x, y: (N, H, W) float32 (NCHW with C=1 squeezed). Returns scalar loss."""
    x = x.astype(jnp.float32)
    y = y.astype(jnp.float32)
    N, H, W = x.shape
    bs = block_size
    if H < bs or W < bs:
        raise ValueError("spatial dims must be >= block_size (Conv2d would fail too)")
    hb = (H - bs) // bs + 1
    wb = (W - bs) // bs + 1
    hbp = _round_up(hb, 8)       # sublane-pad pooled rows
    wbp = _round_up(wb, 128)     # lane-dense pooled cols

    NC = 2                       # core-split axis (2 TCs on v7x; harmless elsewhere)
    # Pick images-per-step from a VMEM budget: 2 inputs x 2 pipeline buffers.
    vmem_block_budget = 24 * 1024 * 1024
    tn_vmem = max(1, vmem_block_budget // (16 * H * W))
    tn = max(1, min(8, tn_vmem, -(-N // NC)))
    steps = -(-N // (NC * tn))
    n_pad = NC * steps * tn
    if n_pad != N:
        # Zero images contribute exactly 0 to numerator and denominator.
        pad = n_pad - N
        x = jnp.pad(x, ((0, pad), (0, 0), (0, 0)))
        y = jnp.pad(y, ((0, pad), (0, 0), (0, 0)))

    kernel = functools.partial(_block_mse_kernel, bs=bs, hb=hb, wb=wb, tn=tn)

    partials = pl.pallas_call(
        kernel,
        out_shape=jax.ShapeDtypeStruct((NC * 8, 128), jnp.float32),
        grid_spec=pltpu.PrefetchScalarGridSpec(
            num_scalar_prefetch=0,
            grid=(NC, steps),
            in_specs=[
                pl.BlockSpec((tn, H, W), lambda c, s: (c * steps + s, 0, 0)),
                pl.BlockSpec((tn, H, W), lambda c, s: (c * steps + s, 0, 0)),
            ],
            out_specs=pl.BlockSpec((8, 128), lambda c, s: (c, 0)),
            scratch_shapes=[
                pltpu.VMEM((hbp, H), jnp.float32),    # P_h (generated in-kernel)
                pltpu.VMEM((W, wbp), jnp.float32),    # P_w (generated in-kernel)
                pltpu.VMEM((hbp, wbp), jnp.float32),  # sum of squared block diffs
                pltpu.VMEM((H, W), jnp.float32),      # sum of (x + y)
            ],
        ),
        compiler_params=pltpu.CompilerParams(
            dimension_semantics=("parallel", "arbitrary"),
            vmem_limit_bytes=48 * 1024 * 1024,
        ),
    )(x, y)

    p = partials.reshape(NC, 8, 128)
    num = jnp.sum(p[:, 0, 0])
    den = jnp.sum(p[:, 0, 1])
    return num / (den + EPS)


def _reference(x, y, block_size):
    """Pure-JAX reference mirroring the PyTorch module."""
    N, H, W = x.shape
    hb = (H - block_size) // block_size + 1
    wb = (W - block_size) // block_size + 1
    xc = x[:, :hb * block_size, :wb * block_size]
    yc = y[:, :hb * block_size, :wb * block_size]
    xb = xc.reshape(N, hb, block_size, wb, block_size).sum(axis=(2, 4))
    yb = yc.reshape(N, hb, block_size, wb, block_size).sum(axis=(2, 4))
    return jnp.sum((xb - yb) ** 2) / (jnp.sum(x) + jnp.sum(y) + EPS)


if __name__ == "__main__":
    key = jax.random.PRNGKey(0)
    kx, ky = jax.random.split(key)
    N, H, W = 2, 32, 32          # NCHW (2, 1, 32, 32) with channel squeezed
    block_size = 16
    # Density-map-like non-negative inputs.
    x = jax.random.uniform(kx, (N, H, W), dtype=jnp.float32)
    y = jax.random.uniform(ky, (N, H, W), dtype=jnp.float32)

    loss = block_mse_loss(x, y, block_size=block_size)
    loss = jax.block_until_ready(loss)

    ref = _reference(x, y, block_size)
    assert jnp.allclose(loss, ref, rtol=1e-5, atol=1e-6), (loss, ref)
    print("KERNEL_OK")
</pallas_src>

<mosaic_0001>
module attributes {stable_mosaic.version = 11 : i64} {
  func.func @_block_mse_kernel(%arg0: i32, %arg1: i32, %arg2: memref<1x32x32xf32, #tpu.memory_space<vmem>>, %arg3: memref<1x32x32xf32, #tpu.memory_space<vmem>>, %arg4: memref<8x128xf32, #tpu.memory_space<vmem>>, %arg5: memref<8x32xf32, #tpu.memory_space<vmem>>, %arg6: memref<32x128xf32, #tpu.memory_space<vmem>>, %arg7: memref<8x128xf32, #tpu.memory_space<vmem>>, %arg8: memref<32x32xf32, #tpu.memory_space<vmem>>) attributes {dimension_semantics = [#tpu.dimension_semantics<parallel>, #tpu.dimension_semantics<arbitrary>], iteration_bounds = array<i64: 2, 1>, scalar_prefetch = 0 : i64, scratch_operands = 4 : i64, tpu.core_type = #tpu.core_type<tc>, window_params = [{transform_indices = @transform_0, window_bounds = array<i64: 1, 32, 32>}, {transform_indices = @transform_1, window_bounds = array<i64: 1, 32, 32>}, {transform_indices = @transform_2, window_bounds = array<i64: 8, 128>}]} {
    %c0_i32 = arith.constant 0 : i32
    %0 = arith.cmpi eq, %arg1, %c0_i32 : i32
    %1 = arith.extui %0 : i1 to i32
    %c0_i32_0 = arith.constant 0 : i32
    %2 = arith.cmpi ne, %1, %c0_i32_0 : i32
    scf.if %2 {
      %23 = tpu.iota {dimensions = array<i32: 0>} : vector<8x32xi32>
      %24 = tpu.iota {dimensions = array<i32: 1>} : vector<8x32xi32>
      %c16_i32 = arith.constant 16 : i32
      %25 = vector.broadcast %c16_i32 : i32 to vector<8x32xi32>
      %26 = arith.muli %23, %25 : vector<8x32xi32>
      %27 = arith.cmpi sge, %24, %26 : vector<8x32xi32>
      %c1_i32 = arith.constant 1 : i32
      %28 = vector.broadcast %c1_i32 : i32 to vector<8x32xi32>
      %29 = arith.addi %23, %28 : vector<8x32xi32>
      %c16_i32_21 = arith.constant 16 : i32
      %30 = vector.broadcast %c16_i32_21 : i32 to vector<8x32xi32>
      %31 = arith.muli %29, %30 : vector<8x32xi32>
      %32 = arith.cmpi slt, %24, %31 : vector<8x32xi32>
      %33 = arith.andi %27, %32 : vector<8x32xi1>
      %c2_i32 = arith.constant 2 : i32
      %34 = vector.broadcast %c2_i32 : i32 to vector<8x32xi32>
      %35 = arith.cmpi slt, %23, %34 : vector<8x32xi32>
      %36 = arith.andi %33, %35 : vector<8x32xi1>
      %37 = arith.extui %36 : vector<8x32xi1> to vector<8x32xi32>
      %38 = arith.sitofp %37 : vector<8x32xi32> to vector<8x32xf32>
      %c0_22 = arith.constant 0 : index
      %c0_23 = arith.constant 0 : index
      %39 = vector.load %arg5[%c0_22, %c0_23] : memref<8x32xf32, #tpu.memory_space<vmem>>, vector<8x32xf32>
      tpu.vector_store %arg5[%c0_22, %c0_23], %38 {strides = array<i32>} : memref<8x32xf32, #tpu.memory_space<vmem>>, vector<8x32xf32>,
      %40 = tpu.iota {dimensions = array<i32: 0>} : vector<32x128xi32>
      %41 = tpu.iota {dimensions = array<i32: 1>} : vector<32x128xi32>
      %c16_i32_24 = arith.constant 16 : i32
      %42 = vector.broadcast %c16_i32_24 : i32 to vector<32x128xi32>
      %43 = arith.muli %41, %42 : vector<32x128xi32>
      %44 = arith.cmpi sge, %40, %43 : vector<32x128xi32>
      %c1_i32_25 = arith.constant 1 : i32
      %45 = vector.broadcast %c1_i32_25 : i32 to vector<32x128xi32>
      %46 = arith.addi %41, %45 : vector<32x128xi32>
      %c16_i32_26 = arith.constant 16 : i32
      %47 = vector.broadcast %c16_i32_26 : i32 to vector<32x128xi32>
      %48 = arith.muli %46, %47 : vector<32x128xi32>
      %49 = arith.cmpi slt, %40, %48 : vector<32x128xi32>
      %50 = arith.andi %44, %49 : vector<32x128xi1>
      %c2_i32_27 = arith.constant 2 : i32
      %51 = vector.broadcast %c2_i32_27 : i32 to vector<32x128xi32>
      %52 = arith.cmpi slt, %41, %51 : vector<32x128xi32>
      %53 = arith.andi %50, %52 : vector<32x128xi1>
      %54 = arith.extui %53 : vector<32x128xi1> to vector<32x128xi32>
      %55 = arith.sitofp %54 : vector<32x128xi32> to vector<32x128xf32>
      %c0_28 = arith.constant 0 : index
      %c0_29 = arith.constant 0 : index
      %56 = vector.load %arg6[%c0_28, %c0_29] : memref<32x128xf32, #tpu.memory_space<vmem>>, vector<32x128xf32>
      tpu.vector_store %arg6[%c0_28, %c0_29], %55 {strides = array<i32>} : memref<32x128xf32, #tpu.memory_space<vmem>>, vector<32x128xf32>,
      %cst_30 = arith.constant 0.000000e+00 : f32
      %57 = vector.broadcast %cst_30 : f32 to vector<8x128xf32>
      %c0_31 = arith.constant 0 : index
      %c0_32 = arith.constant 0 : index
      %58 = vector.load %arg7[%c0_31, %c0_32] : memref<8x128xf32, #tpu.memory_space<vmem>>, vector<8x128xf32>
      tpu.vector_store %arg7[%c0_31, %c0_32], %57 {strides = array<i32>} : memref<8x128xf32, #tpu.memory_space<vmem>>, vector<8x128xf32>,
      %cst_33 = arith.constant 0.000000e+00 : f32
      %59 = vector.broadcast %cst_33 : f32 to vector<32x32xf32>
      %c0_34 = arith.constant 0 : index
      %c0_35 = arith.constant 0 : index
      %60 = vector.load %arg8[%c0_34, %c0_35] : memref<32x32xf32, #tpu.memory_space<vmem>>, vector<32x32xf32>
      tpu.vector_store %arg8[%c0_34, %c0_35], %59 {strides = array<i32>} : memref<32x32xf32, #tpu.memory_space<vmem>>, vector<32x32xf32>,
    } else {
    }
    %c0 = arith.constant 0 : index
    %c0_1 = arith.constant 0 : index
    %3 = vector.load %arg5[%c0, %c0_1] : memref<8x32xf32, #tpu.memory_space<vmem>>, vector<8x32xf32>
    %c0_2 = arith.constant 0 : index
    %c0_3 = arith.constant 0 : index
    %4 = vector.load %arg6[%c0_2, %c0_3] : memref<32x128xf32, #tpu.memory_space<vmem>>, vector<32x128xf32>
    %c0_4 = arith.constant 0 : index
    %c0_5 = arith.constant 0 : index
    %5 = vector.load %arg7[%c0_4, %c0_5] : memref<8x128xf32, #tpu.memory_space<vmem>>, vector<8x128xf32>
    %c0_6 = arith.constant 0 : index
    %c0_7 = arith.constant 0 : index
    %6 = vector.load %arg8[%c0_6, %c0_7] : memref<32x32xf32, #tpu.memory_space<vmem>>, vector<32x32xf32>
    %c0_8 = arith.constant 0 : index
    %c0_9 = arith.constant 0 : index
    %c0_10 = arith.constant 0 : index
    %7 = vector.load %arg2[%c0_8, %c0_9, %c0_10] : memref<1x32x32xf32, #tpu.memory_space<vmem>>, vector<1x32x32xf32>
    %8 = vector.shape_cast %7 : vector<1x32x32xf32> to vector<32x32xf32>
    %c0_11 = arith.constant 0 : index
    %c0_12 = arith.constant 0 : index
    %c0_13 = arith.constant 0 : index
    %9 = vector.load %arg3[%c0_11, %c0_12, %c0_13] : memref<1x32x32xf32, #tpu.memory_space<vmem>>, vector<1x32x32xf32>
    %10 = vector.shape_cast %9 : vector<1x32x32xf32> to vector<32x32xf32>
    %11 = arith.subf %8, %10 : vector<32x32xf32>
    %cst = arith.constant dense<0.000000e+00> : vector<8x32xf32>
    %12 = tpu.matmul %3, %11, %cst {dimension_numbers = #tpu.dot_dimension_numbers<[1], [0], [0], [1], [0, 0, 1, 1], [], []>} : vector<8x32xf32>, vector<32x32xf32>, vector<8x32xf32> -> vector<8x32xf32>
    %cst_14 = arith.constant dense<0.000000e+00> : vector<8x128xf32>
    %13 = tpu.matmul %12, %4, %cst_14 {dimension_numbers = #tpu.dot_dimension_numbers<[1], [0], [0], [1], [0, 0, 1, 1], [], []>} : vector<8x32xf32>, vector<32x128xf32>, vector<8x128xf32> -> vector<8x128xf32>
    %14 = arith.mulf %13, %13 : vector<8x128xf32>
    %15 = arith.addf %5, %14 : vector<8x128xf32>
    %16 = arith.addf %8, %10 : vector<32x32xf32>
    %17 = arith.addf %6, %16 : vector<32x32xf32>
    %c0_15 = arith.constant 0 : index
    %c0_16 = arith.constant 0 : index
    %18 = vector.load %arg7[%c0_15, %c0_16] : memref<8x128xf32, #tpu.memory_space<vmem>>, vector<8x128xf32>
    tpu.vector_store %arg7[%c0_15, %c0_16], %15 {strides = array<i32>} : memref<8x128xf32, #tpu.memory_space<vmem>>, vector<8x128xf32>,
    %c0_17 = arith.constant 0 : index
    %c0_18 = arith.constant 0 : index
    %19 = vector.load %arg8[%c0_17, %c0_18] : memref<32x32xf32, #tpu.memory_space<vmem>>, vector<32x32xf32>
    tpu.vector_store %arg8[%c0_17, %c0_18], %17 {strides = array<i32>} : memref<32x32xf32, #tpu.memory_space<vmem>>, vector<32x32xf32>,
    %c0_i32_19 = arith.constant 0 : i32
    %20 = arith.cmpi eq, %arg1, %c0_i32_19 : i32
    %21 = arith.extui %20 : i1 to i32
    %c0_i32_20 = arith.constant 0 : i32
    %22 = arith.cmpi ne, %21, %c0_i32_20 : i32
    scf.if %22 {
      %c0_21 = arith.constant 0 : index
      %c0_22 = arith.constant 0 : index
      %23 = vector.load %arg7[%c0_21, %c0_22] : memref<8x128xf32, #tpu.memory_space<vmem>>, vector<8x128xf32>
      %24 = vector.shape_cast %23 : vector<8x128xf32> to vector<1x8x128xf32>
      %cst_23 = arith.constant dense<0.000000e+00> : vector<1xf32>
      %25 = vector.multi_reduction <add>, %24, %cst_23 [1, 2] : vector<1x8x128xf32> to vector<1xf32>
      %26 = vector.shape_cast %25 : vector<1xf32> to vector<1x1x1xf32>
      %27 = vector.extract %26[0, 0, 0] : f32 from vector<1x1x1xf32>
      %c0_24 = arith.constant 0 : index
      %c0_25 = arith.constant 0 : index
      %28 = vector.load %arg8[%c0_24, %c0_25] : memref<32x32xf32, #tpu.memory_space<vmem>>, vector<32x32xf32>
      %29 = vector.shape_cast %28 : vector<32x32xf32> to vector<1x32x32xf32>
      %cst_26 = arith.constant dense<0.000000e+00> : vector<1xf32>
      %30 = vector.multi_reduction <add>, %29, %cst_26 [1, 2] : vector<1x32x32xf32> to vector<1xf32>
      %31 = vector.shape_cast %30 : vector<1xf32> to vector<1x1x1xf32>
      %32 = vector.extract %31[0, 0, 0] : f32 from vector<1x1x1xf32>
      %33 = tpu.iota {dimensions = array<i32: 0>} : vector<8x128xi32>
      %34 = tpu.iota {dimensions = array<i32: 1>} : vector<8x128xi32>
      %c0_i32_27 = arith.constant 0 : i32
      %35 = vector.broadcast %c0_i32_27 : i32 to vector<8x128xi32>
      %36 = arith.cmpi eq, %33, %35 : vector<8x128xi32>
      %c0_i32_28 = arith.constant 0 : i32
      %37 = vector.broadcast %c0_i32_28 : i32 to vector<8x128xi32>
      %38 = arith.cmpi eq, %34, %37 : vector<8x128xi32>
      %39 = arith.andi %36, %38 : vector<8x128xi1>
      %c0_i32_29 = arith.constant 0 : i32
      %40 = vector.broadcast %c0_i32_29 : i32 to vector<8x128xi32>
      %41 = arith.cmpi eq, %33, %40 : vector<8x128xi32>
      %c1_i32 = arith.constant 1 : i32
      %42 = vector.broadcast %c1_i32 : i32 to vector<8x128xi32>
      %43 = arith.cmpi eq, %34, %42 : vector<8x128xi32>
      %44 = arith.andi %41, %43 : vector<8x128xi1>
      %cst_30 = arith.constant 0.000000e+00 : f32
      %45 = vector.broadcast %32 : f32 to vector<8x128xf32>
      %46 = vector.broadcast %cst_30 : f32 to vector<8x128xf32>
      %47 = arith.select %44, %45, %46 : vector<8x128xi1>, vector<8x128xf32>
      %48 = vector.broadcast %27 : f32 to vector<8x128xf32>
      %49 = arith.select %39, %48, %47 : vector<8x128xi1>, vector<8x128xf32>
      %c0_31 = arith.constant 0 : index
      %c0_32 = arith.constant 0 : index
      %50 = vector.load %arg4[%c0_31, %c0_32] : memref<8x128xf32, #tpu.memory_space<vmem>>, vector<8x128xf32>
      tpu.vector_store %arg4[%c0_31, %c0_32], %49 {strides = array<i32>} : memref<8x128xf32, #tpu.memory_space<vmem>>, vector<8x128xf32>,
    } else {
    }
    return
  }
  func.func @transform_0(%arg0: i32, %arg1: i32) -> (i32, i32, i32) {
    %c1_i32 = arith.constant 1 : i32
    %0 = arith.muli %arg0, %c1_i32 : i32
    %1 = arith.addi %0, %arg1 : i32
    %c0_i32 = arith.constant 0 : i32
    %c0_i32_0 = arith.constant 0 : i32
    %c0_i32_1 = arith.constant 0 : i32
    return %1, %c0_i32, %c0_i32_0 : i32, i32, i32
  }
  func.func @transform_1(%arg0: i32, %arg1: i32) -> (i32, i32, i32) {
    %c1_i32 = arith.constant 1 : i32
    %0 = arith.muli %arg0, %c1_i32 : i32
    %1 = arith.addi %0, %arg1 : i32
    %c0_i32 = arith.constant 0 : i32
    %c0_i32_0 = arith.constant 0 : i32
    %c0_i32_1 = arith.constant 0 : i32
    return %1, %c0_i32, %c0_i32_0 : i32, i32, i32
  }
  func.func @transform_2(%arg0: i32, %arg1: i32) -> (i32, i32) {
    %c0_i32 = arith.constant 0 : i32
    %c0_i32_0 = arith.constant 0 : i32
    return %arg0, %c0_i32 : i32, i32
  }
}

</mosaic_0001>

<bundles_post_ra>
// kernel: block_mse_loss.1
= control target key start
LH: loop header
LB: loop body
LE: loop exit
PB: predicated region body
PF: predicated region fallthrough
CT: control target
= control target key end

     0   :  { %7 = vsyncpa [#allocation7], 0  ;;  %s1105_s0 = inlined_call_operand.hbm [shape: f32[2,32,32], index: 0, kind: input, shape index: {}]   ;;  %s1106_s1 = inlined_call_operand.hbm [shape: f32[2,32,32], index: 1, kind: input, shape index: {}]   ;;  %s1107_s2 = inlined_call_operand.vmem [shape: f32[16,128], index: 2, kind: output, shape index: {}]  }
   0x1   :  { %9 = vsyncpa [#allocation7 + $0x1], 0 }
   0x2   :  { %10 = vsyncpa [#allocation9], 0 }
   0x3   :  { %12 = vsyncpa [#allocation9 + $0x1], 0  ;;  %s875_s9 = smov 0   ;;  %s877_s10 = smov 0  }
   0x4   :  { %s879_s11 = smov 0   ;;  %s881_s12 = smov 0  }
   0x5   :  { %s883_s13 = smov 0   ;;  %s885_s14 = smov 0  }
   0x6 LB: > { %s611_s15 = sadd.s32 4294967295, %s851_s14   ;;  %s30_s16 = sadd.s32 1, %s847_s13  ;;  %s851_s14 = sphi %s885_s14, %s18_s14   ;;  %s847_s13 = sphi %s883_s13, %s1120_s13   ;;  %s843_s12 = sphi %s881_s12, %s1119_s12   ;;  %s839_s11 = sphi %s879_s11, %s1118_s11   ;;  %s835_s10 = sphi %s877_s10, %s1117_s10   ;;  %s831_s9 = sphi %s875_s9, %s1116_s9  }
   0x7   : > { %p32_p0 = scmp.ge.s32.totalorder %s30_s16, 2  ;;  %s39_s17 = sadd.s32 1, %s839_s11 }
   0x8   : > { %p46_p1 = scmp.ne.s32.totalorder %s839_s11, %s835_s10  ;;  %p47_p2 = scmp.eq.s32.totalorder %s851_s14, 0 }
   0x9   : > { %s1122_s16 = smov (%p32_p0, %s30_s16), 0  ;;  %p52_p4 = scmp.ne.s32.totalorder %s835_s10, %s831_s9 }
   0xa   : > { %p911_p3 = por %p47_p2, %p46_p1  ;;  %s36_s19 = ssub.s32 %s847_s13, %s1122_s16 }
   0xb   : > { %p53_p5 = scmp.eq.s32.totalorder %s611_s15, 0  ;;  %p37_p6 = scmp.eq.s32.totalorder %s36_s19, 0 }
   0xc   : > { %p687_p8 = scmp.lt.s32.totalorder %s851_s14, 2  ;;  %s927_s22 = sand.u32 1, %s839_s11  }
   0xd   : > { %p918_p7 = por %p53_p5, %p52_p4  ;;  %s634_s23 = sshll.u32 %s847_s13, 9 }
   0xe   : > { %s924_s21 = scalar_select %p37_p6, %s839_s11, %s39_s17  }
   0xf   : > { %s615_s24 = sshll.u32 %s927_s22, 5  ;;  %s141_s27 = scalar_lea.hbm %s1105_s0, %s634_s23 }
  0x10   : > { %s134_s28 = scalar_lea.vmem [#allocation6], %s615_s24  ;;  %p938_p9 = pnand %p687_p8, %p911_p3 }
  0x11   : > { %s142_s29 = sshll.u32 %s134_s28, 4  ;;  %s131_s3 = scalar_lea.sflag [#allocation7], %s927_s22  ;;  %s143_s29 = int_to_ptr.vmem [resolvable:$true] %s142_s29 }
  0x12   : > { %p743_p10 = pneg %p938_p9  ;;  %s754_s4 = scalar_lea.vmem %s143_s29, 512 }
  0x13   : > { %p755_p11 = scmp.ne.s32.totalorder %s143_s29, %s754_s4  ;;  %s853_s5 = smov [#allocation6]  }
  0x14   : > { %s759_s6 = sshll.u32 %s853_s5, 4  ;;  %s760_s6 = int_to_ptr.vmem [resolvable:$false] %s759_s6 }
  0x15   : > { %p757_p12 = pnand %p755_p11, %p743_p10  ;;  %s761_s7 = scalar_lea.vmem %s760_s6, 1024 }
  0x16   : > { %p762_p0 = scmp.lt.s32.totalorder %s143_s29, %s760_s6  ;;  %p763_p1 = scmp.lt.s32.totalorder %s761_s7, %s754_s4 }
  0x17   : > { %p758_p13 = pneg %p757_p12 }
  0x18   : > { %p764_p2 = por %p763_p1, %p762_p0 }
  0x1a   : > { %p765_p3 = pnand %p764_p2, %p758_p13 }
  0x1c   : > { %768 = shalt.err (!%p765_p3)
}
  0x1d   : > { %s854_s8 = smov 128   ;;  %s855_s9 = smov 8  }
  0x1e   : > { %683 = dma.hbm_to_vmem [thread:$0]  (!%p938_p9), %s141_s27, 512, %s143_s29, %s131_s3, %s854_s8, %s854_s8, %s855_s9  }
  0x1f   : > { %p621_p4 = scmp.ge.s32.totalorder %s851_s14, 1  ;;  %p172_p5 = scmp.lt.s32.totalorder %s851_s14, 3 }
  0x20   : > { %s163_s19 = scalar_lea.hbm %s1106_s1, %s634_s23  ;;  %s156_s25 = scalar_lea.vmem [#allocation8], %s615_s24 }
  0x21   : > { %p952_p6 = pnand %p621_p4, %p172_p5  ;;  %s164_s26 = sshll.u32 %s156_s25, 4  ;;  %s165_s26 = int_to_ptr.vmem [resolvable:$true] %s164_s26 }
  0x22   : > { %s153_s28 = scalar_lea.sflag [#allocation9], %s927_s22  ;;  %s782_s4 = scalar_lea.vmem %s165_s26, 512 }
  0x23   : > { %p783_p8 = scmp.ne.s32.totalorder %s165_s26, %s782_s4  ;;  %s856_s27 = smov [#allocation8]  }
  0x24   : > { %s787_s29 = sshll.u32 %s856_s27, 4  ;;  %s788_s29 = int_to_ptr.vmem [resolvable:$false] %s787_s29 }
  0x25   : > { %p785_p11 = pnand %p783_p8, %p743_p10  ;;  %s789_s3 = scalar_lea.vmem %s788_s29, 1024 }
  0x26   : > { %p790_p13 = scmp.lt.s32.totalorder %s165_s26, %s788_s29  ;;  %p791_p0 = scmp.lt.s32.totalorder %s789_s3, %s782_s4 }
  0x27   : > { %p786_p12 = pneg %p785_p11 }
  0x28   : > { %p792_p1 = por %p791_p0, %p790_p13 }
  0x2a   : > { %p793_p2 = pnand %p792_p1, %p786_p12 }
  0x2c   : > { %796 = shalt.err (!%p793_p2)
}
  0x2d   : > { %686 = dma.hbm_to_vmem [thread:$0]  (!%p938_p9), %s163_s19, 512, %s165_s26, %s153_s28, %s854_s8, %s854_s8, %s855_s9  }
  0x2e   : > { %176 = sbr.rel (%p952_p6) target bundleno = 671 (0x29f), region = 28  ;;  %s178_s22 = sand.u32 (!%p952_p6), 1, %s835_s10  }
  0x2f   : > { %s622_s23 = sshll.u32 (!%p952_p6), %s178_s22, 5  ;;  %s179_s24 = scalar_lea.sflag (!%p952_p6), [#allocation7], %s178_s22 }
  0x30   : > { %s970_s5 = scalar_lea.vmem (!%p952_p6), [#allocation6], %s622_s23 }
  0x33   : > { %822 = dma.done.wait (%p918_p7), %s179_s24, 512  }
  0x34   : > { %824 = vsyncadd (%p918_p7), %s179_s24, 4294966784  ;;  %s188_s6 = scalar_lea.sflag [#allocation9], %s178_s22  ;;  %s976_s7 = scalar_lea.vmem [#allocation8], %s622_s23 }
  0x35   : > { %826 = dma.done.wait (%p918_p7), %s188_s6, 512  }
  0x36   : > { %828 = vsyncadd (%p918_p7), %s188_s6, 4294966784  ;;  %vm240_vm0 = vcmask 261120   ;;  %v226_v0 = vlaneseq  ;;  %v857_v1 = vmov 0.0   ;;  %vm858_vm1 = vmmov 0   ;;  %v295_v10 = vld [vmem:[%s970_s5 + $0x18] sm:$0xff]  ;;  %v294_v12 = vld [vmem:[%s970_s5 + $0x10] sm:$0xff] }
  0x37   : > { %650 = vmatprep.subr.mxu0 %v857_v1  ;;  %281 = vst.msk [vmem:[#allocation5 + $0x18] sm:$0xff] %vm240_vm0, %v857_v1  ;;  %278 = vst.msk [vmem:[#allocation5] sm:$0xff] %vm240_vm0, %v857_v1  ;;  %658 = vmatprep.mubr.msk.f32.mxu0 %vm858_vm1, %v857_v1  ;;  %v299_v11 = vld [vmem:[%s976_s7 + $0x18] sm:$0xff]  ;;  %v298_v19 = vld [vmem:[%s976_s7 + $0x10] sm:$0xff]  ;;  %v859_v40 = vmov 1.0   ;;  %p218_p7 = scmp.lt.s32.totalorder %s843_s12, 1 }
  0x38   : > { %279 = vst.msk [vmem:[#allocation5 + $0x8] sm:$0xff] %vm240_vm0, %v857_v1  ;;  %280 = vst.msk [vmem:[#allocation5 + $0x10] sm:$0xff] %vm240_vm0, %v857_v1  ;;  %v992_v2 = vshrl.u32 %v226_v0, 7  ;;  %661 = vmatprep.subr.mxu1 %v857_v1  ;;  %669 = vmatprep.mubr.msk.f32.mxu1 %vm858_vm1, %v857_v1  ;;  %v996_v3 = vand.u32 127, %v226_v0  ;;  %v303_v16 = vsub.f32 %v295_v10, %v299_v11  ;;  %v293_v25 = vld [vmem:[%s970_s5 + $0x8] sm:$0xff]  ;;  %v292_v32 = vld [vmem:[%s970_s5] sm:$0xff] }
  0x39   : > { %v456_v17 = vadd.f32 %v299_v11, %v295_v10  ;;  %v302_v22 = vsub.f32 %v294_v12, %v298_v19  ;;  %v455_v23 = vadd.f32 %v298_v19, %v294_v12  ;;  %v297_v26 = vld [vmem:[%s976_s7 + $0x8] sm:$0xff]  ;;  %v296_v33 = vld [vmem:[%s976_s7] sm:$0xff]  ;;  %s1124_s12 = smov (!%p218_p7, %s843_s12), 1 }
  0x3a   : > { %v230_v4 = vmul.u32 16, %v992_v2  ;;  %v232_v5 = vadd.s32 1, %v992_v2  ;;  %v244_v6 = vadd.s32 24, %v992_v2  ;;  %v1002_v7 = vmul.u32 16, %v996_v3  ;;  %651 = vmatpush3.msra.mxu0 %v303_v16  ;;  %s624_s20 = sshll.u32 %s1124_s12, 3 }
  0x3b   : > { %v250_v8 = vadd.s32 1, %v996_v3  ;;  %vm236_vm2 = vcmp.lt.s32.totalorder %v992_v2, 2  ;;  %v243_v14 = vadd.s32 16, %v992_v2  ;;  %v242_v27 = vadd.s32 8, %v992_v2  ;;  %652 = vmatprep.subr.mxu0 %v857_v1  ;;  %s221_s17 = scalar_lea.vmem %s1107_s2, %s624_s20 }
  0x3c   : > { %v233_v9 = vmul.u32 16, %v232_v5  ;;  %vm1014_vm3 = vcmp.ge.s32.totalorder %v996_v3, %v230_v4  ;;  %vm249_vm5 = vcmp.ge.s32.totalorder %v244_v6, %v1002_v7  ;;  %v301_v29 = vsub.f32 %v293_v25, %v297_v26  ;;  %653 = vmatpush3.msra.mxu0 %v302_v22 }
  0x3d   : > { %v1009_v13 = vmul.u32 16, %v250_v8  ;;  %v454_v30 = vadd.f32 %v297_v26, %v293_v25  ;;  %v453_v35 = vadd.f32 %v296_v33, %v292_v32  ;;  %vm260_vm8 = vcmp.lt.s32.totalorder %v996_v3, 2  ;;  %654 = vmatprep.subr.mxu0 %v857_v1 }
  0x3e   : > { %v291_v15 = vld [vmem:[#allocation5 + $0x18] sm:$0xff]  ;;  %vm1019_vm4 = vcmp.lt.s32.totalorder %v996_v3, %v233_v9  ;;  %v288_v31 = vld [vmem:[#allocation5] sm:$0xff]  ;;  %v300_v37 = vsub.f32 %v292_v32, %v296_v33  ;;  %vm248_vm10 = vcmp.ge.s32.totalorder %v243_v14, %v1002_v7  ;;  %655 = vmatpush3.msra.mxu0 %v301_v29  ;;  %vm247_vm14 = vcmp.ge.s32.totalorder %v242_v27, %v1002_v7 }
  0x3f   : > { %v290_v18 = vld [vmem:[#allocation5 + $0x10] sm:$0xff]  ;;  %v289_v24 = vld [vmem:[#allocation5 + $0x8] sm:$0xff]  ;;  %v460_v28 = vadd.f32 %v456_v17, %v291_v15  ;;  %vm255_vm6 = vcmp.lt.s32.totalorder %v244_v6, %v1009_v13  ;;  %vm235_vm7 = vmand %vm1014_vm3, %vm1019_vm4  ;;  %vm254_vm11 = vcmp.lt.s32.totalorder %v243_v14, %v1009_v13  ;;  %v457_v38 = vadd.f32 %v453_v35, %v288_v31  ;;  %656 = vmatprep.subr.mxu0 %v857_v1 }
  0x40   : > { %v459_v34 = vadd.f32 %v455_v23, %v290_v18  ;;  %v458_v36 = vadd.f32 %v454_v30, %v289_v24  ;;  %vm237_vm9 = vmand %vm235_vm7, %vm236_vm2  ;;  %vm253_vm15 = vcmp.lt.s32.totalorder %v242_v27, %v1009_v13  ;;  %657 = vmatpush3.msra.mxu0 %v300_v37 }
  0x41   : > { %465 = vst.msk [vmem:[#allocation5 + $0x18] sm:$0xff] %vm240_vm0, %v460_v28  ;;  %v625_v39 = vsel %vm237_vm9, 1.0, %v857_v1  ;;  %vm259_vm12 = vmand %vm249_vm5, %vm255_vm6  ;;  %vm246_vm5 = vcmp.ge.s32.totalorder %v992_v2, %v1002_v7  ;;  %vm252_vm6 = vcmp.lt.s32.totalorder %v992_v2, %v1009_v13 }
  0x42   : > { %464 = vst.msk [vmem:[#allocation5 + $0x10] sm:$0xff] %vm240_vm0, %v459_v34  ;;  %463 = vst.msk [vmem:[#allocation5 + $0x8] sm:$0xff] %vm240_vm0, %v458_v36 }
  0x43   : > { %241 = vst.msk [vmem:[#allocation2] sm:$0xff] %vm240_vm0, %v625_v39  ;;  %vm264_vm13 = vmand %vm259_vm12, %vm260_vm8 }
  0x44   : > { %462 = vst.msk [vmem:[#allocation5] sm:$0xff] %vm240_vm0, %v457_v38  ;;  %662 = vmatpush3.msk.msra.mxu1 %vm264_vm13, %v859_v40  ;;  %vm258_vm1 = vmand %vm248_vm10, %vm254_vm11  ;;  %vm504_vm10 = vcmp.eq.s32.totalorder %v996_v3, 0 }
  0x45   : > { %663 = vmatprep.subr.mxu1 %v857_v1  ;;  %vm263_vm2 = vmand %vm258_vm1, %vm260_vm8 }
  0x46   : > { %664 = vmatpush3.msk.msra.mxu1 %vm263_vm2, %v859_v40  ;;  %vm257_vm3 = vmand %vm247_vm14, %vm253_vm15 }
  0x47   : > { %665 = vmatprep.subr.mxu1 %v857_v1  ;;  %vm262_vm4 = vmand %vm257_vm3, %vm260_vm8 }
  0x48   : > { %666 = vmatpush3.msk.msra.mxu1 %vm262_vm4, %v859_v40  ;;  %vm256_vm7 = vmand %vm246_vm5, %vm252_vm6  ;;  %v482_v51 = vld [vmem:[#allocation5 + $0x18] sm:$0xff] }
  0x49   : > { %667 = vmatprep.subr.mxu1 %v857_v1  ;;  %vm261_vm9 = vmand %vm256_vm7, %vm260_vm8  ;;  %v480_v45 = vld [vmem:[#allocation5 + $0x8] sm:$0xff]  ;;  %v481_v48 = vld [vmem:[#allocation5 + $0x10] sm:$0xff]  ;;  %v488_v54 = vsel %vm240_vm0, %v482_v51, 0.0  ;;  %vm506_vm8 = vcmp.eq.s32.totalorder %v996_v3, 1 }
  0x4a   : > { %v282_v41 = vld [vmem:[#allocation2] sm:$0xff]  ;;  %668 = vmatpush3.msk.msra.mxu1 %vm261_vm9, %v859_v40  ;;  %v484_v47 = vsel %vm240_vm0, %v480_v45, 0.0  ;;  %v486_v50 = vsel %vm240_vm0, %v481_v48, 0.0 }
  0x4b   : > { %659 = vmatmul.mubr.msk.f32.vlgmr.msra.gmra.mxu0 %vm240_vm0, %v282_v41  ;;  %v479_v44 = vld [vmem:[#allocation5] sm:$0xff] }
  0x4c   : > { %v483_v46 = vsel %vm240_vm0, %v479_v44, 0.0 }
  0x4d   : > { %v485_v49 = vadd.f32 %v484_v47, %v483_v46 }
  0x4f   : > { %v487_v52 = vadd.f32 %v486_v50, %v485_v49 }
  0x51   : > { %v489_v57 = vadd.f32 %v488_v54, %v487_v52 }
 0x10b   : > { %v374_v42 = vpop.f32.mrf.mxu0 }
 0x10c   : > { %670 = vmatmul.mubr.msk.f32.vlgmr.msra.gmra.mxu1 %vm240_vm0, %v374_v42  ;;  %vm503_vm0 = vcmp.eq.s32.totalorder %v992_v2, 0 }
 0x10d   : > { %v660_v43 = vpop.f32.mrf.mxu0  ;;  %vm507_vm11 = vmand %vm503_vm0, %vm506_vm8 }
 0x10e   : > { %vm505_vm12 = vmand %vm503_vm0, %vm504_vm10 }
 0x1cc   : > { %v447_v53 = vpop.f32.mrf.mxu1 }
 0x1cd   : > { %v451_v55 = vmul.f32 %v447_v53, %v447_v53 }
 0x1ce   : > { %v671_v56 = vpop.f32.mrf.mxu1 }
 0x1cf   : > { %470 = vadd.xlane.f32.xlu0 %v451_v55 }
 0x1d3   : > { %490 = vadd.xlane.f32.xlu0 %v489_v57 }
 0x258   : > { %v471_v58 = vpop.xlane.xlu0 %470 }
 0x259   : > { %v472_v59 = vrot.slane %v471_v58, 4 }
 0x25b   : > { %v473_v60 = vadd.f32 %v472_v59, %v471_v58 }
 0x25c   : > { %v491_v61 = vpop.xlane.xlu0 %490 }
 0x25d   : > { %v474_v62 = vrot.slane %v473_v60, 2  ;;  %v492_v63 = vrot.slane %v491_v61, 4 }
 0x25f   : > { %v493_v0 = vadd.f32 %v492_v63, %v491_v61  ;;  %v475_v1 = vadd.f32 %v474_v62, %v473_v60 }
 0x261   : > { %v494_v4 = vrot.slane %v493_v0, 2  ;;  %v476_v5 = vrot.slane %v475_v1, 1 }
 0x263   : > { %v495_v6 = vadd.f32 %v494_v4, %v493_v0  ;;  %v477_v7 = vadd.f32 %v476_v5, %v475_v1 }
 0x265   : > { %672 = vpush %v477_v7  ;;  %v496_v8 = vrot.slane %v495_v6, 1 }
 0x267   : > { %v497_v9 = vadd.f32 %v496_v8, %v495_v6 }
 0x269   : > { %674 = vpush %v497_v9 }
 0x296   : > { %s673_s30 = spop %672 }
 0x297   : > { %v510_v11 = vstv %s673_s30 }
 0x29a   : > { %s675_s8 = spop %674 }
 0x29b   : > { %v508_v10 = vstv %s675_s8 }
 0x29c   : > { %v509_v12 = vsel %vm507_vm11, %v508_v10, 0.0 }
 0x29d   : > { %v511_v13 = vsel %vm505_vm12, %v510_v11, %v509_v12 }
 0x29e   : > { %512 = vst [vmem:[%s221_s17] sm:$0xff] %v511_v13 }
 0x29f PF: > { %s18_s14 = sadd.s32 1, %s851_s14   ;;  %s1116_s9 = smov %s835_s10 }
 0x2a0   : > { %p15_p9 = scmp.ge.s32.totalorder %s18_s14, 4   ;;  %s1117_s10 = smov %s839_s11 }
 0x2a1   : > { %s1118_s11 = smov %s924_s21  ;;  %s1119_s12 = smov %s847_s13 }
 0x2a2   : > { %s1120_s13 = smov %s1122_s16  ;;  %17 = sbr.rel (!%p15_p9) target bundleno = 6 (0x6), region = 89 }
 0x2a7   :  { %532 = vsyncpa [#allocation7], 1 }
 0x2a8   :  { %534 = vsyncpa [#allocation7 + $0x1], 1 }
 0x2a9   :  { %535 = vsyncpa [#allocation9], 1 }
 0x2aa   :  { %537 = vsyncpa [#allocation9 + $0x1], 1 }

</bundles_post_ra>
